<compile_context>
chip_gen: v6e
topology: v6e:2x2x1
jax: 0.10.0
libtpu: 0.0.40
codegen_flags: <defaults>
</compile_context>

<pallas_src>
import jax
import jax.numpy as jnp
from jax.experimental import pallas as pl
from jax.experimental.pallas import tpu as pltpu


def _scoring_attention_kernel(aud_ref, img_ref, wa_ref, ba_ref, wc_ref, bc_ref, s_ref):
    # aud_ref: (Bt, T, D)  audio embeddings (f32 or bf16)
    # img_ref: (Bt, S, T)  image embedding in its native layout (no transpose)
    # wa_ref : (1, D)      folded audio weight row  (W1 @ W2 @ W3)^T
    # ba_ref : (1, 1)      folded audio bias
    # wc_ref : (S, S)      folded image weight      Wi1 @ Wi2
    # bc_ref : (1, S)      folded image bias        bi1 @ Wi2 + bi2
    # s_ref  : (1, Bt) lane-dense row  OR  (Bt, 1) column fallback

    # Folded audio encoder: per-frame scalar score = VPU multiply + lane reduce (no MXU).
    a = jnp.sum(aud_ref[...] * wa_ref[...], axis=-1) + ba_ref[...]          # (Bt, T) f32
    v = jnp.sum(a, axis=-1, keepdims=True)                                  # (Bt, 1)  sum_t a[b,t]

    # Contract over audio frames first, directly on the native (Bt, S, T) image layout.
    z = jnp.sum(img_ref[...] * a[:, None, :], axis=-1)                      # (Bt, S)

    # Folded image encoder applied to the contracted vector; biases scaled by v.
    att = (jnp.dot(z, wc_ref[...], preferred_element_type=jnp.float32)
           + v * bc_ref[...])                                               # (Bt, S)

    smax = jnp.max(att, axis=-1)                                            # (Bt,)
    if s_ref.shape[0] == 1:        # lane-dense (1, Bt) output block
        s_ref[0, :] = smax
    else:                          # (Bt, 1) column fallback
        s_ref[...] = smax[:, None]


def _choose_block_b(B, T, S, D, aud_bytes, img_bytes, budget_bytes):
    """VMEM-aware batch tile.

    Per-batch cost uses the (8,128)-padded VMEM footprint of each slab, times 3
    (2 pipeline buffers + ~1 in-kernel temporary for the multiply/reduce)."""
    t_sub = max(8, pl.cdiv(T, 8) * 8)            # audio second-minor padding
    d_lane = max(128, pl.cdiv(D, 128) * 128)     # audio minor padding
    s_sub = max(8, pl.cdiv(S, 8) * 8)            # image second-minor padding
    t_lane = max(128, pl.cdiv(T, 128) * 128)     # image minor padding (T<128 inflates ~8x)
    per_b = 3 * (t_sub * d_lane * aud_bytes + s_sub * t_lane * img_bytes)
    cap = max(8, min(512, (budget_bytes // per_b) // 8 * 8))
    b8 = pl.cdiv(B, 8) * 8
    if b8 <= cap:
        # Whole batch fits one step. Split in two once it is big enough so
        # dimension_semantics=("parallel",) has >=2 steps to shard across TensorCores.
        return b8 if b8 < 32 else max(8, pl.cdiv(b8, 16) * 8)
    if cap >= 128:
        return (cap // 128) * 128   # lane-aligned -> legal & lane-dense (1, block_b) out blocks
    return cap


def scoring_attention_forward(image_embedding, audio_embeddings, audio_nframes, params,
                              *, block_b=None, vmem_budget_bytes=24 * 2**20):
    """Forward pass of ScoringAttentionModule.

    image_embedding : (B, 49, T)  -- channel dim must equal the audio frame dim
    audio_embeddings: (B, T, 512) f32 (bf16 also accepted and streamed as-is)
    audio_nframes   : unused (normalise() is the identity in the reference module)
    params          : dict of the five Linear layers, weights stored as (in, out) = W^T
    returns         : (B, 1) f32 scores
    """
    del audio_nframes   # normalise() is the identity; no frame masking in the reference.
    B, S, C = image_embedding.shape
    Ba, T, D = audio_embeddings.shape
    assert B == Ba and C == T, "torch.bmm requires image channel dim == audio frame dim"

    f32, hi = jnp.float32, jax.lax.Precision.HIGHEST
    w1 = params['w1'].astype(f32); b1 = params['b1'].reshape(1, -1).astype(f32)
    w2 = params['w2'].astype(f32); b2 = params['b2'].reshape(1, -1).astype(f32)
    w3 = params['w3'].reshape(-1, 1).astype(f32); b3 = params['b3'].reshape(1, 1).astype(f32)
    wi1 = params['wi1'].astype(f32); bi1 = params['bi1'].reshape(1, -1).astype(f32)
    wi2 = params['wi2'].astype(f32); bi2 = params['bi2'].reshape(1, -1).astype(f32)

    # Trace-time folds of the activation-free Linear chains (exact up to f32 rounding).
    w23 = jnp.dot(w2, w3, precision=hi)                                        # (256, 1)
    wa = jnp.dot(w1, w23, precision=hi).reshape(1, D)                          # (1, 512)
    ba = jnp.dot(b1, w23, precision=hi) + jnp.dot(b2, w3, precision=hi) + b3   # (1, 1)
    wc = jnp.dot(wi1, wi2, precision=hi)                                       # (49, 49)
    bc = jnp.dot(bi1, wi2, precision=hi) + bi2                                 # (1, 49)

    if block_b is None:
        block_b = _choose_block_b(
            B, T, S, D,
            jnp.dtype(audio_embeddings.dtype).itemsize,
            jnp.dtype(image_embedding.dtype).itemsize,
            vmem_budget_bytes)
    grid_b = pl.cdiv(B, block_b)
    b_pad = grid_b * block_b
    if b_pad != B:
        # TODO(synk): a masked tail tile would avoid this extra HBM pad pass for awkward B.
        audio_embeddings = jnp.pad(audio_embeddings, ((0, b_pad - B), (0, 0), (0, 0)))
        image_embedding = jnp.pad(image_embedding, ((0, b_pad - B), (0, 0), (0, 0)))

    def batched_spec(shape):
        nd = len(shape)
        return pl.BlockSpec((block_b,) + tuple(shape[1:]),
                            lambda i, _n=nd: (i,) + (0,) * (_n - 1))

    def resident_spec(shape):
        nd = len(shape)
        return pl.BlockSpec(tuple(shape), lambda i, _n=nd: (0,) * _n)

    # Lane-dense (1, B) output whenever the block layout allows it; else (B, 1) column.
    lane_dense = (grid_b == 1) or (block_b % 128 == 0)
    if lane_dense:
        out_shape = jax.ShapeDtypeStruct((1, b_pad), jnp.float32)
        out_specs = pl.BlockSpec((1, block_b), lambda i: (0, i))
    else:
        out_shape = jax.ShapeDtypeStruct((b_pad, 1), jnp.float32)
        out_specs = pl.BlockSpec((block_b, 1), lambda i: (i, 0))

    out = pl.pallas_call(
        _scoring_attention_kernel,
        out_shape=out_shape,
        grid=(grid_b,),
        in_specs=[batched_spec(audio_embeddings.shape),
                  batched_spec(image_embedding.shape),
                  resident_spec(wa.shape), resident_spec(ba.shape),
                  resident_spec(wc.shape), resident_spec(bc.shape)],
        out_specs=out_specs,
        compiler_params=pltpu.CompilerParams(
            dimension_semantics=("parallel",),
            # 2x headroom over the estimated per-step footprint, capped at 64 MiB so the
            # limit is valid on v7x and still raises v5e's 16 MiB default.
            vmem_limit_bytes=int(min(max(2 * vmem_budget_bytes, 32 * 2**20), 64 * 2**20))),
    )(audio_embeddings, image_embedding, wa, ba, wc, bc)

    if lane_dense:
        return out[0, :B].reshape(B, 1)
    return out[:B]


if __name__ == "__main__":
    B, T, D, S = 2, 16, 512, 49   # batch, audio frames (== image channel dim), audio feat, 7x7 spatial
    key = jax.random.PRNGKey(0)
    keys = jax.random.split(key, 8)

    def linear_params(k, fan_in, fan_out):
        # nn.Linear-style init (uniform +/- 1/sqrt(fan_in)); weights stored as (in, out) = W^T.
        kw, kb = jax.random.split(k)
        bound = 1.0 / jnp.sqrt(jnp.float32(fan_in))
        w = jax.random.uniform(kw, (fan_in, fan_out), jnp.float32, -bound, bound)
        b = jax.random.uniform(kb, (1, fan_out), jnp.float32, -bound, bound)
        return w, b

    w1, b1 = linear_params(keys[0], 512, 256)
    w2, b2 = linear_params(keys[1], 256, 128)
    w3, b3 = linear_params(keys[2], 128, 1)
    wi1, bi1 = linear_params(keys[3], 49, 49)
    wi2, bi2 = linear_params(keys[4], 49, 49)
    params = dict(w1=w1, b1=b1, w2=w2, b2=b2, w3=w3, b3=b3,
                  wi1=wi1, bi1=bi1, wi2=wi2, bi2=bi2)

    image_embedding = jax.random.normal(keys[5], (B, S, T), jnp.float32)    # (B, 49, T)
    audio_embeddings = jax.random.normal(keys[6], (B, T, D), jnp.float32)   # (B, T, 512)
    audio_nframes = jnp.full((B,), T, jnp.int32)                            # unused (normalise == identity)

    s = scoring_attention_forward(image_embedding, audio_embeddings, audio_nframes, params)
    s = jax.block_until_ready(s)

    # Pure f32 reference following the PyTorch forward op-for-op (no bf16 anywhere).
    def ref():
        h = audio_embeddings @ w1 + b1
        h = h @ w2 + b2
        a = h @ w3 + b3                                   # (B, T, 1)
        im = jnp.swapaxes(image_embedding, 1, 2)          # (B, T, 49) == .transpose(1, 2)
        im = im @ wi1 + bi1
        im = im @ wi2 + bi2
        att = jnp.einsum('bti,btj->bij', a, im)           # (B, 1, 49)
        return att.max(axis=-1)                           # (B, 1)

    with jax.default_matmul_precision('float32'):
        r = jax.block_until_ready(ref())

    assert s.shape == (B, 1)
    assert jnp.allclose(s, r, rtol=2e-2, atol=2e-2), (s, r)
    print("KERNEL_OK")
</pallas_src>

<mosaic_0001>
module attributes {stable_mosaic.version = 11 : i64} {
  func.func @_scoring_attention_kernel(%arg0: i32, %arg1: memref<8x16x512xf32, #tpu.memory_space<vmem>>, %arg2: memref<8x49x16xf32, #tpu.memory_space<vmem>>, %arg3: memref<1x512xf32, #tpu.memory_space<vmem>>, %arg4: memref<1x1xf32, #tpu.memory_space<vmem>>, %arg5: memref<49x49xf32, #tpu.memory_space<vmem>>, %arg6: memref<1x49xf32, #tpu.memory_space<vmem>>, %arg7: memref<1x8xf32, #tpu.memory_space<vmem>>) attributes {dimension_semantics = [#tpu.dimension_semantics<parallel>], iteration_bounds = array<i64: 1>, scalar_prefetch = 0 : i64, scratch_operands = 0 : i64, tpu.core_type = #tpu.core_type<tc>, window_params = [{transform_indices = @transform_0, window_bounds = array<i64: 8, 16, 512>}, {transform_indices = @transform_1, window_bounds = array<i64: 8, 49, 16>}, {pipeline_mode = #tpu.pipeline_mode<synchronous>, transform_indices = @transform_2, window_bounds = array<i64: 1, 512>}, {pipeline_mode = #tpu.pipeline_mode<synchronous>, transform_indices = @transform_3, window_bounds = array<i64: 1, 1>}, {pipeline_mode = #tpu.pipeline_mode<synchronous>, transform_indices = @transform_4, window_bounds = array<i64: 49, 49>}, {pipeline_mode = #tpu.pipeline_mode<synchronous>, transform_indices = @transform_5, window_bounds = array<i64: 1, 49>}, {transform_indices = @transform_6, window_bounds = array<i64: 1, 8>}]} {
    %c0 = arith.constant 0 : index
    %c0_0 = arith.constant 0 : index
    %c0_1 = arith.constant 0 : index
    %0 = vector.load %arg1[%c0, %c0_0, %c0_1] : memref<8x16x512xf32, #tpu.memory_space<vmem>>, vector<8x16x512xf32>
    %c0_2 = arith.constant 0 : index
    %c0_3 = arith.constant 0 : index
    %1 = vector.load %arg3[%c0_2, %c0_3] : memref<1x512xf32, #tpu.memory_space<vmem>>, vector<1x512xf32>
    %2 = vector.shape_cast %1 : vector<1x512xf32> to vector<1x1x512xf32>
    %3 = vector.broadcast %2 : vector<1x1x512xf32> to vector<8x16x512xf32>
    %4 = arith.mulf %0, %3 : vector<8x16x512xf32>
    %cst = arith.constant dense<0.000000e+00> : vector<8x16xf32>
    %5 = vector.multi_reduction <add>, %4, %cst [2] : vector<8x16x512xf32> to vector<8x16xf32>
    %c0_4 = arith.constant 0 : index
    %c0_5 = arith.constant 0 : index
    %6 = vector.load %arg4[%c0_4, %c0_5] : memref<1x1xf32, #tpu.memory_space<vmem>>, vector<1x1xf32>
    %7 = vector.broadcast %6 : vector<1x1xf32> to vector<8x16xf32>
    %8 = arith.addf %5, %7 : vector<8x16xf32>
    %cst_6 = arith.constant dense<0.000000e+00> : vector<8xf32>
    %9 = vector.multi_reduction <add>, %8, %cst_6 [1] : vector<8x16xf32> to vector<8xf32>
    %10 = vector.shape_cast %9 : vector<8xf32> to vector<8x1xf32>
    %c0_7 = arith.constant 0 : index
    %c0_8 = arith.constant 0 : index
    %c0_9 = arith.constant 0 : index
    %11 = vector.load %arg2[%c0_7, %c0_8, %c0_9] : memref<8x49x16xf32, #tpu.memory_space<vmem>>, vector<8x49x16xf32>
    %12 = vector.shape_cast %8 : vector<8x16xf32> to vector<8x1x16xf32>
    %13 = vector.broadcast %12 : vector<8x1x16xf32> to vector<8x49x16xf32>
    %14 = arith.mulf %11, %13 : vector<8x49x16xf32>
    %cst_10 = arith.constant dense<0.000000e+00> : vector<8x49xf32>
    %15 = vector.multi_reduction <add>, %14, %cst_10 [2] : vector<8x49x16xf32> to vector<8x49xf32>
    %c0_11 = arith.constant 0 : index
    %c0_12 = arith.constant 0 : index
    %16 = vector.load %arg5[%c0_11, %c0_12] : memref<49x49xf32, #tpu.memory_space<vmem>>, vector<49x49xf32>
    %cst_13 = arith.constant dense<0.000000e+00> : vector<8x49xf32>
    %17 = tpu.matmul %15, %16, %cst_13 {dimension_numbers = #tpu.dot_dimension_numbers<[1], [0], [0], [1], [0, 0, 1, 1], [], []>} : vector<8x49xf32>, vector<49x49xf32>, vector<8x49xf32> -> vector<8x49xf32>
    %c0_14 = arith.constant 0 : index
    %c0_15 = arith.constant 0 : index
    %18 = vector.load %arg6[%c0_14, %c0_15] : memref<1x49xf32, #tpu.memory_space<vmem>>, vector<1x49xf32>
    %19 = vector.broadcast %10 : vector<8x1xf32> to vector<8x49xf32>
    %20 = vector.broadcast %18 : vector<1x49xf32> to vector<8x49xf32>
    %21 = arith.mulf %19, %20 : vector<8x49xf32>
    %22 = arith.addf %17, %21 : vector<8x49xf32>
    %cst_16 = arith.constant dense<0xFF800000> : vector<8xf32>
    %23 = vector.multi_reduction <maximumf>, %22, %cst_16 [1] : vector<8x49xf32> to vector<8xf32>
    %c0_17 = arith.constant 0 : index
    %c0_18 = arith.constant 0 : index
    %24 = vector.load %arg7[%c0_17, %c0_18] : memref<1x8xf32, #tpu.memory_space<vmem>>, vector<1x8xf32>
    %25 = vector.shape_cast %24 : vector<1x8xf32> to vector<8xf32>
    %26 = vector.shape_cast %23 : vector<8xf32> to vector<1x8xf32>
    tpu.vector_store %arg7[%c0_17, %c0_18], %26 {strides = array<i32>} : memref<1x8xf32, #tpu.memory_space<vmem>>, vector<1x8xf32>,
    return
  }
  func.func @transform_0(%arg0: i32) -> (i32, i32, i32) {
    %c0_i32 = arith.constant 0 : i32
    %c0_i32_0 = arith.constant 0 : i32
    %c0_i32_1 = arith.constant 0 : i32
    return %arg0, %c0_i32, %c0_i32_0 : i32, i32, i32
  }
  func.func @transform_1(%arg0: i32) -> (i32, i32, i32) {
    %c0_i32 = arith.constant 0 : i32
    %c0_i32_0 = arith.constant 0 : i32
    %c0_i32_1 = arith.constant 0 : i32
    return %arg0, %c0_i32, %c0_i32_0 : i32, i32, i32
  }
  func.func @transform_2(%arg0: i32) -> (i32, i32) {
    %c0_i32 = arith.constant 0 : i32
    %c0_i32_0 = arith.constant 0 : i32
    %c0_i32_1 = arith.constant 0 : i32
    return %c0_i32, %c0_i32_0 : i32, i32
  }
  func.func @transform_3(%arg0: i32) -> (i32, i32) {
    %c0_i32 = arith.constant 0 : i32
    %c0_i32_0 = arith.constant 0 : i32
    %c0_i32_1 = arith.constant 0 : i32
    return %c0_i32, %c0_i32_0 : i32, i32
  }
  func.func @transform_4(%arg0: i32) -> (i32, i32) {
    %c0_i32 = arith.constant 0 : i32
    %c0_i32_0 = arith.constant 0 : i32
    %c0_i32_1 = arith.constant 0 : i32
    return %c0_i32, %c0_i32_0 : i32, i32
  }
  func.func @transform_5(%arg0: i32) -> (i32, i32) {
    %c0_i32 = arith.constant 0 : i32
    %c0_i32_0 = arith.constant 0 : i32
    %c0_i32_1 = arith.constant 0 : i32
    return %c0_i32, %c0_i32_0 : i32, i32
  }
  func.func @transform_6(%arg0: i32) -> (i32, i32) {
    %c0_i32 = arith.constant 0 : i32
    %c0_i32_0 = arith.constant 0 : i32
    return %c0_i32, %arg0 : i32, i32
  }
}

</mosaic_0001>

<bundles_post_ra>
// kernel: tpu_custom_call.1
= control target key start
LH: loop header
LB: loop body
LE: loop exit
PB: predicated region body
PF: predicated region fallthrough
CT: control target
= control target key end

     0   :  { %s2177_s0 = inlined_call_operand.vmem [shape: f32[8,16,512], index: 0, kind: input, shape index: {}]   ;;  %s2178_s1 = inlined_call_operand.vmem [shape: f32[8,49,16], index: 1, kind: input, shape index: {}]   ;;  %s2179_s2 = inlined_call_operand.vmem [shape: f32[1,512], index: 2, kind: input, shape index: {}]   ;;  %s2180_s3 = inlined_call_operand.<no memory space> [shape: f32[1,1], index: 3, kind: input, shape index: {}]   ;;  %s2181_s4 = inlined_call_operand.vmem [shape: f32[49,49], index: 4, kind: input, shape index: {}]   ;;  %s2182_s5 = inlined_call_operand.vmem [shape: f32[1,49], index: 5, kind: input, shape index: {}]   ;;  %s2183_s6 = inlined_call_operand.hbm [shape: f32[1,8], index: 6, kind: output, shape index: {}]  }
   0x1   :  { %v11_v0 = vstv %s2180_s3 }
   0x2   :  { %12 = vst [vmem:[#allocation2] sm:$0x1] %v11_v0 }
   0x3   :  { %v92_v1 = vlaneseq  ;;  %v1256_v2 = vmov 0   ;;  %v90_v4 = vld [vmem:[%s2179_s2] sm:$0xf]  ;;  %v27_v10 = vld [vmem:[%s2177_s0 + $0x8] sm:$0xff]  ;;  %v28_v11 = vld [vmem:[%s2177_s0 + $0x10] sm:$0xff] }
   0x4   :  { %1233 = vset.pattern.permute.xlu0 %v1256_v2  ;;  %v26_v5 = vld [vmem:[%s2177_s0] sm:$0xff]  ;;  %v29_v12 = vld [vmem:[%s2177_s0 + $0x18] sm:$0xff]  ;;  %v31_v18 = vld [vmem:[%s2177_s0 + $0x28] sm:$0xff] }
   0x5   :  { %v1299_v3 = vshrl.u32 %v92_v1, 7  ;;  %v30_v17 = vld [vmem:[%s2177_s0 + $0x20] sm:$0xff]  ;;  %v32_v19 = vld [vmem:[%s2177_s0 + $0x30] sm:$0xff]  ;;  %v35_v21 = vld [vmem:[%s2177_s0 + $0x48] sm:$0xff] }
   0x6   :  { %v34_v20 = vld [vmem:[%s2177_s0 + $0x40] sm:$0xff]  ;;  %v36_v22 = vld [vmem:[%s2177_s0 + $0x50] sm:$0xff]  ;;  %v33_v26 = vld [vmem:[%s2177_s0 + $0x38] sm:$0xff] }
   0x7   :  { %v94_v6 = vsub.s32 0, %v1299_v3  ;;  %v98_v7 = vsub.s32 1, %v1299_v3  ;;  %v102_v8 = vsub.s32 2, %v1299_v3  ;;  %v106_v9 = vsub.s32 3, %v1299_v3  ;;  %v42_v27 = vld [vmem:[%s2177_s0 + $0x80] sm:$0xff]  ;;  %v43_v28 = vld [vmem:[%s2177_s0 + $0x88] sm:$0xff] }
   0x8   :  { %v37_v33 = vld [vmem:[%s2177_s0 + $0x58] sm:$0xff]  ;;  %v44_v34 = vld [vmem:[%s2177_s0 + $0x90] sm:$0xff]  ;;  %v38_v39 = vld [vmem:[%s2177_s0 + $0x60] sm:$0xff] }
   0x9   :  { %v1320_v13 = vrot.slane %v90_v4, %v94_v6  ;;  %v1322_v14 = vrot.slane %v90_v4, %v98_v7  ;;  %v1324_v15 = vrot.slane %v90_v4, %v102_v8  ;;  %v1326_v16 = vrot.slane %v90_v4, %v106_v9  ;;  %v39_v40 = vld [vmem:[%s2177_s0 + $0x68] sm:$0xff]  ;;  %v45_v43 = vld [vmem:[%s2177_s0 + $0x98] sm:$0xff]  ;;  %v40_v46 = vld [vmem:[%s2177_s0 + $0x70] sm:$0xff] }
   0xa   :  { %v41_v51 = vld [vmem:[%s2177_s0 + $0x78] sm:$0xff]  ;;  %v50_v52 = vld [vmem:[%s2177_s0 + $0xc0] sm:$0xff]  ;;  %v51_v57 = vld [vmem:[%s2177_s0 + $0xc8] sm:$0xff] }
   0xb   :  { %v112_v23 = vmul.f32 %v1320_v13, %v26_v5  ;;  %v113_v24 = vmul.f32 %v1322_v14, %v27_v10  ;;  %v114_v25 = vmul.f32 %v1324_v15, %v28_v11  ;;  %v115_v29 = vmul.f32 %v1326_v16, %v29_v12  ;;  %v52_v58 = vld [vmem:[%s2177_s0 + $0xd0] sm:$0xff]  ;;  %v53_v63 = vld [vmem:[%s2177_s0 + $0xd8] sm:$0xff]  ;;  %v46_v0 = vld [vmem:[%s2177_s0 + $0xa0] sm:$0xff] }
   0xc   :  { %v116_v30 = vmul.f32 %v1320_v13, %v30_v17  ;;  %v117_v31 = vmul.f32 %v1322_v14, %v31_v18  ;;  %v118_v32 = vmul.f32 %v1324_v15, %v32_v19  ;;  %v120_v36 = vmul.f32 %v1320_v13, %v34_v20  ;;  %v47_v2 = vld [vmem:[%s2177_s0 + $0xa8] sm:$0xff]  ;;  %v48_v8 = vld [vmem:[%s2177_s0 + $0xb0] sm:$0xff]  ;;  %v49_v9 = vld [vmem:[%s2177_s0 + $0xb8] sm:$0xff] }
   0xd   :  { %v176_v35 = vadd.f32 %v113_v24, %v112_v23  ;;  %v121_v37 = vmul.f32 %v1322_v14, %v35_v21  ;;  %v122_v38 = vmul.f32 %v1324_v15, %v36_v22  ;;  %v119_v41 = vmul.f32 %v1326_v16, %v33_v26  ;;  %v58_v10 = vld [vmem:[%s2177_s0 + $0x100] sm:$0xff]  ;;  %v59_v19 = vld [vmem:[%s2177_s0 + $0x108] sm:$0xff]  ;;  %v60_v20 = vld [vmem:[%s2177_s0 + $0x110] sm:$0xff] }
   0xe   :  { %v181_v42 = vadd.f32 %v117_v31, %v116_v30  ;;  %v128_v44 = vmul.f32 %v1320_v13, %v42_v27  ;;  %v129_v45 = vmul.f32 %v1322_v14, %v43_v28  ;;  %v123_v48 = vmul.f32 %v1326_v16, %v37_v33  ;;  %v55_v26 = vld [vmem:[%s2177_s0 + $0xe8] sm:$0xff]  ;;  %v61_v30 = vld [vmem:[%s2177_s0 + $0x118] sm:$0xff] }
   0xf   :  { %v177_v47 = vadd.f32 %v176_v35, %v114_v25  ;;  %v186_v49 = vadd.f32 %v121_v37, %v120_v36  ;;  %v130_v50 = vmul.f32 %v1324_v15, %v44_v34  ;;  %v124_v55 = vmul.f32 %v1320_v13, %v38_v39  ;;  %v54_v25 = vld [vmem:[%s2177_s0 + $0xe0] sm:$0xff]  ;;  %v57_v37 = vld [vmem:[%s2177_s0 + $0xf8] sm:$0xff]  ;;  %v67_v39 = vld [vmem:[%s2177_s0 + $0x148] sm:$0xff] }
  0x10   :  { %v182_v53 = vadd.f32 %v181_v42, %v118_v32  ;;  %v196_v54 = vadd.f32 %v129_v45, %v128_v44  ;;  %v125_v56 = vmul.f32 %v1322_v14, %v39_v40  ;;  %v131_v61 = vmul.f32 %v1326_v16, %v45_v43  ;;  %v56_v32 = vld [vmem:[%s2177_s0 + $0xf0] sm:$0xff]  ;;  %v69_v45 = vld [vmem:[%s2177_s0 + $0x158] sm:$0xff] }
  0x11   :  { %v178_v59 = vadd.f32 %v177_v47, %v115_v29  ;;  %v187_v60 = vadd.f32 %v186_v49, %v122_v38  ;;  %v126_v62 = vmul.f32 %v1324_v15, %v40_v46  ;;  %v127_v5 = vmul.f32 %v1326_v16, %v41_v51  ;;  %v66_v38 = vld [vmem:[%s2177_s0 + $0x140] sm:$0xff]  ;;  %v68_v44 = vld [vmem:[%s2177_s0 + $0x150] sm:$0xff]  ;;  %v63_v51 = vld [vmem:[%s2177_s0 + $0x128] sm:$0xff] }
  0x12   :  { %v183_v4 = vadd.f32 %v182_v53, %v119_v41  ;;  %v191_v6 = vadd.f32 %v125_v56, %v124_v55  ;;  %v136_v7 = vmul.f32 %v1320_v13, %v50_v52  ;;  %v197_v12 = vadd.f32 %v196_v54, %v130_v50  ;;  %v62_v50 = vld [vmem:[%s2177_s0 + $0x120] sm:$0xff]  ;;  %v64_v52 = vld [vmem:[%s2177_s0 + $0x130] sm:$0xff] }
  0x13   :  { %179 = vadd.xlane.f32.xlu0 %v178_v59  ;;  %v188_v11 = vadd.f32 %v187_v60, %v123_v48  ;;  %v137_v17 = vmul.f32 %v1322_v14, %v51_v57  ;;  %v138_v18 = vmul.f32 %v1324_v15, %v52_v58  ;;  %v139_v22 = vmul.f32 %v1326_v16, %v53_v63  ;;  %v65_v57 = vld [vmem:[%s2177_s0 + $0x138] sm:$0xff]  ;;  %v74_v58 = vld [vmem:[%s2177_s0 + $0x180] sm:$0xff] }
  0x14   :  { %v192_v21 = vadd.f32 %v191_v6, %v126_v62  ;;  %v132_v23 = vmul.f32 %v1320_v13, %v46_v0  ;;  %v133_v24 = vmul.f32 %v1322_v14, %v47_v2  ;;  %v134_v28 = vmul.f32 %v1324_v15, %v48_v8 }
  0x15   :  { %189 = vadd.xlane.f32.xlu1 %v188_v11  ;;  %v206_v27 = vadd.f32 %v137_v17, %v136_v7  ;;  %v135_v29 = vmul.f32 %v1326_v16, %v49_v9  ;;  %v144_v31 = vmul.f32 %v1320_v13, %v58_v10  ;;  %v145_v35 = vmul.f32 %v1322_v14, %v59_v19 }
  0x16   :  { %v193_v33 = vadd.f32 %v192_v21, %v127_v5  ;;  %v201_v34 = vadd.f32 %v133_v24, %v132_v23  ;;  %v146_v36 = vmul.f32 %v1324_v15, %v60_v20  ;;  %v198_v40 = vadd.f32 %v197_v12, %v131_v61 }
  0x17   :  { %184 = vadd.xlane.f32.xlu0 %v183_v4  ;;  %v207_v41 = vadd.f32 %v206_v27, %v138_v18  ;;  %v140_v42 = vmul.f32 %v1320_v13, %v54_v25  ;;  %v141_v43 = vmul.f32 %v1322_v14, %v55_v26  ;;  %v147_v47 = vmul.f32 %v1326_v16, %v61_v30 }
  0x18   :  { %v202_v46 = vadd.f32 %v201_v34, %v134_v28  ;;  %v216_v48 = vadd.f32 %v145_v35, %v144_v31  ;;  %v142_v49 = vmul.f32 %v1324_v15, %v56_v32  ;;  %v143_v53 = vmul.f32 %v1326_v16, %v57_v37 }
  0x19   :  { %194 = vadd.xlane.f32.xlu1 %v193_v33  ;;  %v211_v54 = vadd.f32 %v141_v43, %v140_v42  ;;  %v152_v55 = vmul.f32 %v1320_v13, %v66_v38  ;;  %v153_v56 = vmul.f32 %v1322_v14, %v67_v39 }
  0x1a   :  { %13 = vsyncpa [#allocation4], 0  ;;  %v208_v59 = vadd.f32 %v207_v41, %v139_v22  ;;  %v203_v60 = vadd.f32 %v202_v46, %v135_v29  ;;  %v217_v61 = vadd.f32 %v216_v48, %v146_v36  ;;  %v154_v62 = vmul.f32 %v1324_v15, %v68_v44  ;;  %v75_v63 = vld [vmem:[%s2177_s0 + $0x188] sm:$0xff]  ;;  %v76_v6 = vld [vmem:[%s2177_s0 + $0x190] sm:$0xff]  ;;  %s1259_s14 = smov [#allocation3]  }
  0x1b   :  { %199 = vadd.xlane.f32.xlu0 %v198_v40  ;;  %v212_v0 = vadd.f32 %v211_v54, %v142_v49  ;;  %v226_v2 = vadd.f32 %v153_v56, %v152_v55  ;;  %v148_v4 = vmul.f32 %v1320_v13, %v62_v50  ;;  %v149_v5 = vmul.f32 %v1322_v14, %v63_v51  ;;  %v70_v7 = vld [vmem:[%s2177_s0 + $0x160] sm:$0xff]  ;;  %v71_v8 = vld [vmem:[%s2177_s0 + $0x168] sm:$0xff]  ;;  %v72_v17 = vld [vmem:[%s2177_s0 + $0x170] sm:$0xff]  ;;  %s1192_s15 = sshll.u32 %s1259_s14, 4  ;;  %s1193_s15 = int_to_ptr.vmem [resolvable:$true] %s1192_s15 }
  0x1c   :  { %v155_v9 = vmul.f32 %v1326_v16, %v69_v45  ;;  %v150_v10 = vmul.f32 %v1324_v15, %v64_v52  ;;  %v151_v11 = vmul.f32 %v1326_v16, %v65_v57  ;;  %v160_v12 = vmul.f32 %v1320_v13, %v74_v58  ;;  %v82_v22 = vld [vmem:[%s2177_s0 + $0x1c0] sm:$0xff]  ;;  %v83_v23 = vld [vmem:[%s2177_s0 + $0x1c8] sm:$0xff]  ;;  %v77_v24 = vld [vmem:[%s2177_s0 + $0x198] sm:$0xff]  ;;  %s1234_s16 = scalar_lea.vmem %s1193_s15, 16  ;;  %s1238_s17 = scalar_lea.vmem %s1193_s15, 32 }
  0x1d   :  { %204 = vadd.xlane.f32.xlu1 %v203_v60  ;;  %v213_v18 = vadd.f32 %v212_v0, %v143_v53  ;;  %v227_v19 = vadd.f32 %v226_v2, %v154_v62  ;;  %v221_v20 = vadd.f32 %v149_v5, %v148_v4  ;;  %v161_v21 = vmul.f32 %v1322_v14, %v75_v63  ;;  %v73_v26 = vld [vmem:[%s2177_s0 + $0x178] sm:$0xff]  ;;  %v78_v33 = vld [vmem:[%s2177_s0 + $0x1a0] sm:$0xff]  ;;  %v79_v34 = vld [vmem:[%s2177_s0 + $0x1a8] sm:$0xff]  ;;  %p1235_p0 = scmp.ne.s32.totalorder %s1193_s15, %s1234_s16  ;;  %p1239_p1 = scmp.lt.s32.totalorder %s1193_s15, %s1193_s15 }
  0x1e   :  { %v162_v25 = vmul.f32 %v1324_v15, %v76_v6  ;;  %v156_v27 = vmul.f32 %v1320_v13, %v70_v7  ;;  %v157_v28 = vmul.f32 %v1322_v14, %v71_v8  ;;  %v218_v29 = vadd.f32 %v217_v61, %v147_v47  ;;  %v84_v36 = vld [vmem:[%s2177_s0 + $0x1d0] sm:$0xff]  ;;  %v86_v40 = vld [vmem:[%s2177_s0 + $0x1e0] sm:$0xff]  ;;  %v87_v45 = vld [vmem:[%s2177_s0 + $0x1e8] sm:$0xff]  ;;  %p1240_p2 = scmp.lt.s32.totalorder %s1238_s17, %s1234_s16 }
  0x1f   :  { %209 = vadd.xlane.f32.xlu0 %v208_v59  ;;  %v222_v30 = vadd.f32 %v221_v20, %v150_v10  ;;  %v236_v31 = vadd.f32 %v161_v21, %v160_v12  ;;  %v158_v32 = vmul.f32 %v1324_v15, %v72_v17  ;;  %v168_v37 = vmul.f32 %v1320_v13, %v82_v22  ;;  %v80_v39 = vld [vmem:[%s2177_s0 + $0x1b0] sm:$0xff]  ;;  %v81_v48 = vld [vmem:[%s2177_s0 + $0x1b8] sm:$0xff]  ;;  %v1200_v8 = vld [vmem:[#allocation2] ss:$0 sm:$0xff] }
  0x20   :  { %v231_v35 = vadd.f32 %v157_v28, %v156_v27  ;;  %v169_v38 = vmul.f32 %v1322_v14, %v83_v23  ;;  %v228_v41 = vadd.f32 %v227_v19, %v155_v9  ;;  %v163_v43 = vmul.f32 %v1326_v16, %v77_v24  ;;  %v88_v51 = vld [vmem:[%s2177_s0 + $0x1f0] sm:$0xff]  ;;  %v85_v56 = vld [vmem:[%s2177_s0 + $0x1d8] sm:$0xff]  ;;  %p1241_p3 = por %p1240_p2, %p1239_p1 }
  0x21   :  { %214 = vadd.xlane.f32.xlu1 %v213_v18  ;;  %v223_v42 = vadd.f32 %v222_v30, %v151_v11  ;;  %v159_v44 = vmul.f32 %v1326_v16, %v73_v26  ;;  %v237_v46 = vadd.f32 %v236_v31, %v162_v25  ;;  %v164_v49 = vmul.f32 %v1320_v13, %v78_v33  ;;  %v89_v63 = vld [vmem:[%s2177_s0 + $0x1f8] sm:$0xff] }
  0x22   :  { %v232_v47 = vadd.f32 %v231_v35, %v158_v32  ;;  %v165_v50 = vmul.f32 %v1322_v14, %v79_v34  ;;  %v170_v52 = vmul.f32 %v1324_v15, %v84_v36  ;;  %v246_v53 = vadd.f32 %v169_v38, %v168_v37  ;;  %p1242_p4 = pnand %p1241_p3, %p1235_p0 }
  0x23   :  { %219 = vadd.xlane.f32.xlu0 %v218_v29  ;;  %v166_v54 = vmul.f32 %v1324_v15, %v80_v39  ;;  %v172_v55 = vmul.f32 %v1320_v13, %v86_v40  ;;  %v173_v58 = vmul.f32 %v1322_v14, %v87_v45  ;;  %v167_v60 = vmul.f32 %v1326_v16, %v81_v48  ;;  %v414_v40 = vld [vmem:[%s2178_s1 + $0xa8] sm:$0xff]  ;;  %v405_v48 = vld [vmem:[%s2178_s1 + $0x60] sm:$0xff] }
  0x24   :  { %v241_v57 = vadd.f32 %v165_v50, %v164_v49  ;;  %v233_v59 = vadd.f32 %v232_v47, %v159_v44  ;;  %v174_v61 = vmul.f32 %v1324_v15, %v88_v51  ;;  %v238_v13 = vadd.f32 %v237_v46, %v163_v43  ;;  %v393_v43 = vld [vmem:[%s2178_s1] sm:$0xff]  ;;  %v394_v49 = vld [vmem:[%s2178_s1 + $0x8] sm:$0xff] }
  0x25   :  { %224 = vadd.xlane.f32.xlu1 %v223_v42  ;;  %v251_v0 = vadd.f32 %v173_v58, %v172_v55  ;;  %v171_v2 = vmul.f32 %v1326_v16, %v85_v56  ;;  %v247_v4 = vadd.f32 %v246_v53, %v170_v52  ;;  %v175_v14 = vmul.f32 %v1326_v16, %v89_v63 }
  0x26   :  { %v242_v62 = vadd.f32 %v241_v57, %v166_v54  ;;  %v1575_v23 = vand.u32 127, %v92_v1  ;;  %vm309_vm0 = vcmask 130112   ;;  %vm389_vm1 = vcmask 130048  }
  0x27   :  { %229 = vadd.xlane.f32.xlu0 %v228_v41  ;;  %v252_v6 = vadd.f32 %v251_v0, %v174_v61  ;;  %v248_v7 = vadd.f32 %v247_v4, %v171_v2  ;;  %v428_v2 = vld [vmem:[%s2178_s1 + $0x118] sm:$0xff]  ;;  %v401_v4 = vld [vmem:[%s2178_s1 + $0x40] sm:$0xff]  ;;  %vm587_vm2 = vcmask 122880   ;;  %vm374_vm3 = vcmask 1041409  }
  0x28   :  { %v243_v5 = vadd.f32 %v242_v62, %v167_v60  ;;  %v304_v25 = vadd.s32 4294967288, %v1575_v23  ;;  %v1582_v27 = vsub.s32 %v1575_v23, %v1299_v3  ;;  %v400_v60 = vld [vmem:[%s2178_s1 + $0x38] sm:$0xff]  ;;  %vm376_vm4 = vcmask 1042434  }
  0x29   :  { %234 = vadd.xlane.f32.xlu1 %v233_v59  ;;  %v253_v15 = vadd.f32 %v252_v6, %v175_v14  ;;  %v417_v59 = vld [vmem:[%s2178_s1 + $0xc0] sm:$0xff]  ;;  %vm378_vm5 = vcmask 1043459   ;;  %vm380_vm6 = vcmask 1044484   ;;  %vm382_vm7 = vcmask 1045509  }
  0x2a   :  { %v1585_v28 = vsub.s32 %v304_v25, %v1299_v3  ;;  %vm384_vm8 = vcmask 1046534   ;;  %vm386_vm9 = vcmask 1047559   ;;  %vm1101_vm10 = vcmask 1040384  }
  0x2b   :  { %239 = vadd.xlane.f32.xlu0 %v238_v13  ;;  %vm823_vm11 = vcmask 195712   ;;  %vm1258_vm12 = vmmov 0   ;;  %vm830_vm13 = vcmask 261312   ;;  %vm837_vm14 = vcmask 326912  }
  0x2c   :  { %vm844_vm15 = vcmask 392512  }
  0x2d   :  { %244 = vadd.xlane.f32.xlu1 %v243_v5 }
  0x2f   :  { %249 = vadd.xlane.f32.xlu0 %v248_v7 }
  0x31   :  { %254 = vadd.xlane.f32.xlu1 %v253_v15 }
  0x45   :  { %263 = vperm.xlu0 %1233, %v1200_v8  }
  0x9c   :  { %v180_v9 = vpop.xlane.xlu0 %179 }
  0x9e   :  { %v190_v11 = vpop.xlane.xlu1 %189 }
  0xa0   :  { %v185_v10 = vpop.xlane.xlu0 %184 }
  0xa2   :  { %v195_v18 = vpop.xlane.xlu1 %194 }
  0xa4   :  { %v200_v12 = vpop.xlane.xlu0 %199 }
  0xa6   :  { %v205_v20 = vpop.xlane.xlu1 %204 }
  0xa8   :  { %v210_v17 = vpop.xlane.xlu0 %209 }
  0xaa   :  { %v215_v22 = vpop.xlane.xlu1 %214 }
  0xac   :  { %v220_v19 = vpop.xlane.xlu0 %219 }
  0xae   :  { %v225_v24 = vpop.xlane.xlu1 %224 }
  0xb0   :  { %v230_v21 = vpop.xlane.xlu0 %229 }
  0xb2   :  { %v235_v30 = vpop.xlane.xlu1 %234 }
  0xb4   :  { %v1572_v16 = vpop.xlane.xlu0 %239 }
  0xb6   :  { %v245_v6 = vpop.xlane.xlu1 %244 }
  0xb8   :  { %v1578_v26 = vpop.xlane.xlu0 %249 }
  0xc0   :  { %v1587_v29 = vpop.permute.xlu0 %263 }
  0xc1   :  { %v272_v31 = vadd.f32 %v1587_v29, %v210_v17  ;;  %v273_v1 = vadd.f32 %v1587_v29, %v215_v22  ;;  %v266_v32 = vadd.f32 %v1587_v29, %v180_v9  ;;  %v267_v33 = vadd.f32 %v1587_v29, %v185_v10  ;;  %v399_v17 = vld [vmem:[%s2178_s1 + $0x30] sm:$0x1] }
  0xc2   :  { %v268_v34 = vadd.f32 %v1587_v29, %v190_v11  ;;  %v269_v35 = vadd.f32 %v1587_v29, %v195_v18  ;;  %v276_v36 = vadd.f32 %v1587_v29, %v230_v21  ;;  %v277_v37 = vadd.f32 %v1587_v29, %v235_v30 }
  0xc3   :  { %v332_v38 = vrot.slane %v272_v31, %v1582_v27  ;;  %v336_v39 = vrot.slane %v273_v1, %v1585_v28  ;;  %v303_v41 = vrot.slane %v266_v32, %v1582_v27  ;;  %v308_v42 = vrot.slane %v267_v33, %v1585_v28  ;;  %v402_v1 = vld [vmem:[%s2178_s1 + $0x48] sm:$0xff] }
  0xc4   :  { %v314_v44 = vrot.slane %v268_v34, %v1582_v27  ;;  %v318_v45 = vrot.slane %v269_v35, %v1585_v28  ;;  %v350_v53 = vrot.slane %v276_v36, %v1582_v27  ;;  %v354_v54 = vrot.slane %v277_v37, %v1585_v28  ;;  %v255_v34 = vpop.xlane.xlu1 %254  ;;  %v412_v36 = vld [vmem:[%s2178_s1 + $0x98] sm:$0xff]  ;;  %v407_v37 = vld [vmem:[%s2178_s1 + $0x70] sm:$0xff] }
  0xc5   :  { %v1610_v46 = vsel %vm309_vm0, %v336_v39, %v332_v38  ;;  %v1613_v47 = vsel %vm309_vm0, %v308_v42, %v303_v41  ;;  %v270_v5 = vadd.f32 %v1587_v29, %v200_v12  ;;  %v271_v14 = vadd.f32 %v1587_v29, %v205_v20  ;;  %v395_v12 = vld [vmem:[%s2178_s1 + $0x10] sm:$0xff]  ;;  %v408_v38 = vld [vmem:[%s2178_s1 + $0x78] sm:$0xff]  ;;  %v413_v39 = vld [vmem:[%s2178_s1 + $0xa0] sm:$0x1] }
  0xc6   :  { %v534_v50 = vmul.f32 %v414_v40, %v1610_v46  ;;  %v513_v51 = vmul.f32 %v393_v43, %v1613_v47  ;;  %v1624_v52 = vsel %vm309_vm0, %v318_v45, %v314_v44  ;;  %v514_v58 = vmul.f32 %v394_v49, %v1613_v47  ;;  %v424_v44 = vld [vmem:[%s2178_s1 + $0xf8] sm:$0xff]  ;;  %v435_v49 = vld [vmem:[%s2178_s1 + $0x150] sm:$0xff] }
  0xc7   :  { %v525_v57 = vmul.f32 %v405_v48, %v1624_v52  ;;  %v537_v61 = vmul.f32 %v417_v59, %v1610_v46  ;;  %v520_v0 = vmul.f32 %v400_v60, %v1624_v52  ;;  %v1643_v13 = vsel %vm309_vm0, %v354_v54, %v350_v53 }
  0xc8   :  { %v633_v55 = vsel %vm389_vm1, %v534_v50, 0.0  ;;  %v569_v56 = vsel %vm389_vm1, %v513_v51, 0.0  ;;  %v572_v63 = vsel %vm389_vm1, %v514_v58, 0.0  ;;  %v548_v15 = vmul.f32 %v428_v2, %v1643_v13  ;;  %v396_v50 = vld [vmem:[%s2178_s1 + $0x18] sm:$0xff] }
  0xc9   :  { %634 = vadd.xlane.f32.xlu0 %v633_v55  ;;  %570 = vadd.xlane.f32.xlu1 %v569_v56  ;;  %v606_v62 = vsel %vm389_vm1, %v525_v57, 0.0  ;;  %v642_v7 = vsel %vm389_vm1, %v537_v61, 0.0  ;;  %v274_v8 = vadd.f32 %v1587_v29, %v220_v19  ;;  %v275_v9 = vadd.f32 %v1587_v29, %v225_v24  ;;  %v398_v57 = vld [vmem:[%s2178_s1 + $0x28] sm:$0xff]  ;;  %v429_v61 = vld [vmem:[%s2178_s1 + $0x120] sm:$0xff] }
  0xca   :  { %v591_v10 = vsel %vm389_vm1, %v520_v0, 0.0  ;;  %v521_v11 = vmul.f32 %v401_v4, %v1624_v52  ;;  %v278_v18 = vadd.f32 %v1587_v29, %v1572_v16  ;;  %v279_v20 = vadd.f32 %v1587_v29, %v245_v6  ;;  %v406_v4 = vld [vmem:[%s2178_s1 + $0x68] sm:$0x1] }
  0xcb   :  { %v323_v19 = vrot.slane %v270_v5, %v1582_v27  ;;  %v327_v21 = vrot.slane %v271_v14, %v1585_v28  ;;  %v519_v22 = vmul.f32 %v399_v17, %v1613_v47  ;;  %v515_v24 = vmul.f32 %v395_v12, %v1613_v47  ;;  %v418_v5 = vld [vmem:[%s2178_s1 + $0xc8] sm:$0xff]  ;;  %v436_v12 = vld [vmem:[%s2178_s1 + $0x158] sm:$0xff] }
  0xcc   :  { %v341_v25 = vrot.slane %v274_v8, %v1582_v27  ;;  %v345_v30 = vrot.slane %v275_v9, %v1585_v28  ;;  %v675_v31 = vsel %vm389_vm1, %v548_v15, 0.0  ;;  %v594_v16 = vsel %vm389_vm1, %v521_v11, 0.0  ;;  %v430_v8 = vld [vmem:[%s2178_s1 + $0x128] sm:$0xff] }
  0xcd   :  { %607 = vadd.xlane.f32.xlu0 %v606_v62  ;;  %573 = vadd.xlane.f32.xlu1 %v572_v63  ;;  %v359_v32 = vrot.slane %v278_v18, %v1582_v27  ;;  %v363_v33 = vrot.slane %v279_v20, %v1585_v28  ;;  %v1682_v35 = vsel %vm309_vm0, %v327_v21, %v323_v19  ;;  %v588_v40 = vsel %vm587_vm2, %v519_v22, 0.0  ;;  %v419_v22 = vld [vmem:[%s2178_s1 + $0xd0] sm:$0xff] }
  0xce   :  { %v575_v41 = vsel %vm389_vm1, %v515_v24, 0.0  ;;  %v522_v42 = vmul.f32 %v402_v1, %v1624_v52  ;;  %v1700_v43 = vsel %vm309_vm0, %v345_v30, %v341_v25  ;;  %v532_v45 = vmul.f32 %v412_v36, %v1682_v35  ;;  %v431_v24 = vld [vmem:[%s2178_s1 + $0x130] sm:$0xff]  ;;  %v442_v1 = vld [vmem:[%s2178_s1 + $0x188] sm:$0xff] }
  0xcf   :  { %v1707_v48 = vsel %vm309_vm0, %v363_v33, %v359_v32  ;;  %v280_v51 = vadd.f32 %v1587_v29, %v1578_v26  ;;  %v281_v53 = vadd.f32 %v1587_v29, %v255_v34  ;;  %v527_v54 = vmul.f32 %v407_v37, %v1682_v35  ;;  %v403_v26 = vld [vmem:[%s2178_s1 + $0x50] sm:$0xff]  ;;  %v420_v32 = vld [vmem:[%s2178_s1 + $0xd8] sm:$0x1] }
  0xd0   :  { %v528_v55 = vmul.f32 %v408_v38, %v1682_v35  ;;  %v533_v56 = vmul.f32 %v413_v39, %v1682_v35  ;;  %v544_v58 = vmul.f32 %v424_v44, %v1700_v43  ;;  %v597_v29 = vsel %vm389_vm1, %v522_v42, 0.0  ;;  %v432_v38 = vld [vmem:[%s2178_s1 + $0x138] sm:$0xff] }
  0xd1   :  { %643 = vadd.xlane.f32.xlu0 %v642_v7  ;;  %592 = vadd.xlane.f32.xlu1 %v591_v10  ;;  %v555_v59 = vmul.f32 %v435_v49, %v1707_v48  ;;  %v1731_v60 = vmul.f32 %v396_v50, %v1613_v47  ;;  %v627_v62 = vsel %vm389_vm1, %v532_v45, 0.0  ;;  %v368_v63 = vrot.slane %v280_v51, %v1582_v27  ;;  %v444_v44 = vld [vmem:[%s2178_s1 + $0x198] sm:$0xff] }
  0xd2   :  { %v372_v0 = vrot.slane %v281_v53, %v1585_v28  ;;  %v518_v2 = vmul.f32 %v398_v57, %v1613_v47  ;;  %v612_v14 = vsel %vm389_vm1, %v527_v54, 0.0  ;;  %v615_v6 = vsel %vm389_vm1, %v528_v55, 0.0  ;;  %v433_v53 = vld [vmem:[%s2178_s1 + $0x140] sm:$0xff]  ;;  %v440_v55 = vld [vmem:[%s2178_s1 + $0x178] sm:$0xff] }
  0xd3   :  { %v1749_v7 = vsel %vm587_vm2, %v533_v56, 0.0  ;;  %v1752_v15 = vmul.f32 %v403_v26, %v1624_v52  ;;  %v663_v9 = vsel %vm389_vm1, %v544_v58, 0.0  ;;  %v375_v11 = vsel %vm374_vm3, %v1624_v52, %v1613_v47  ;;  %v445_v54 = vld [vmem:[%s2178_s1 + $0x1a0] sm:$0xff] }
  0xd4   :  { %v1759_v10 = vsel %vm389_vm1, %v518_v2, 0.0  ;;  %v549_v17 = vmul.f32 %v429_v61, %v1643_v13  ;;  %v696_v18 = vsel %vm389_vm1, %v555_v59, 0.0  ;;  %v377_v20 = vsel %vm376_vm4, %v1682_v35, %v375_v11  ;;  %v448_v59 = vld [vmem:[%s2178_s1 + $0x1b8] sm:$0x1]  ;;  %v425_v61 = vld [vmem:[%s2178_s1 + $0x100] sm:$0xff] }
  0xd5   :  { %676 = vadd.xlane.f32.xlu0 %v675_v31  ;;  %595 = vadd.xlane.f32.xlu1 %v594_v16  ;;  %v526_v19 = vmul.f32 %v406_v4, %v1624_v52  ;;  %v538_v21 = vmul.f32 %v418_v5, %v1610_v46  ;;  %v1780_v25 = vsel %vm309_vm0, %v372_v0, %v368_v63 }
  0xd6   :  { %v379_v30 = vsel %vm378_vm5, %v1610_v46, %v377_v20  ;;  %v1785_v31 = vsel %vm389_vm1, %v549_v17, 0.0  ;;  %v550_v16 = vmul.f32 %v430_v8, %v1643_v13  ;;  %v556_v37 = vmul.f32 %v436_v12, %v1707_v48 }
  0xd7   :  { %v381_v33 = vsel %vm380_vm6, %v1700_v43, %v379_v30  ;;  %v1797_v34 = vsel %vm587_vm2, %v526_v19, 0.0  ;;  %v1800_v36 = vsel %vm389_vm1, %v538_v21, 0.0  ;;  %v551_v42 = vmul.f32 %v431_v24, %v1643_v13  ;;  %v409_v21 = vld [vmem:[%s2178_s1 + $0x80] sm:$0xff] }
  0xd8   :  { %v383_v39 = vsel %vm382_vm7, %v1643_v13, %v381_v33  ;;  %v1819_v49 = vsel %vm389_vm1, %v556_v37, 0.0  ;;  %v562_v50 = vmul.f32 %v442_v1, %v1780_v25  ;;  %v540_v51 = vmul.f32 %v420_v32, %v1610_v46  ;;  %v443_v32 = vld [vmem:[%s2178_s1 + $0x190] sm:$0xff] }
  0xd9   :  { %589 = vadd.xlane.f32.xlu0 %v588_v40  ;;  %576 = vadd.xlane.f32.xlu1 %v575_v41  ;;  %v1809_v40 = vsel %vm389_vm1, %v550_v16, 0.0  ;;  %v539_v41 = vmul.f32 %v419_v22, %v1610_v46  ;;  %v385_v45 = vsel %vm384_vm8, %v1707_v48, %v383_v39  ;;  %v1838_v58 = vsel %vm389_vm1, %v551_v42, 0.0  ;;  %v415_v33 = vld [vmem:[%s2178_s1 + $0xb0] sm:$0xff]  ;;  %v397_v42 = vld [vmem:[%s2178_s1 + $0x20] sm:$0xff] }
  0xda   :  { %v387_v56 = vsel %vm386_vm9, %v1780_v25, %v385_v45  ;;  %v552_v26 = vmul.f32 %v432_v38, %v1643_v13  ;;  %v1854_v63 = vsel %vm389_vm1, %v562_v50, 0.0  ;;  %v1857_v0 = vsel %vm587_vm2, %v540_v51, 0.0 }
  0xdb   :  { %v1835_v57 = vsel %vm389_vm1, %v539_v41, 0.0  ;;  %v564_v2 = vmul.f32 %v444_v44, %v1780_v25  ;;  %v553_v5 = vmul.f32 %v433_v53, %v1643_v13  ;;  %v578_v8 = vsel %vm389_vm1, %v1731_v60, 0.0  ;;  %v437_v60 = vld [vmem:[%s2178_s1 + $0x160] sm:$0xff]  ;;  %v426_v41 = vld [vmem:[%s2178_s1 + $0x108] sm:$0xff] }
  0xdc   :  { %v1861_v4 = vsel %vm389_vm1, %v552_v26, 0.0  ;;  %v568_v17 = vmul.f32 %v448_v59, %v1780_v25  ;;  %v545_v12 = vmul.f32 %v425_v61, %v1700_v43  ;;  %v557_v16 = vmul.f32 %v437_v60, %v1707_v48  ;;  %v438_v53 = vld [vmem:[%s2178_s1 + $0x168] sm:$0xff] }
  0xdd   :  { %628 = vadd.xlane.f32.xlu0 %v627_v62  ;;  %598 = vadd.xlane.f32.xlu1 %v597_v29  ;;  %v441_v29 = vld [vmem:[%s2178_s1 + $0x180] sm:$0x1]  ;;  %v1851_v62 = vsel %vm389_vm1, %v387_v56, 0.0  ;;  %v529_v1 = vmul.f32 %v409_v21, %v1682_v35  ;;  %v535_v39 = vmul.f32 %v415_v33, %v1610_v46  ;;  %v546_v50 = vmul.f32 %v426_v41, %v1700_v43  ;;  %v410_v59 = vld [vmem:[%s2178_s1 + $0x88] sm:$0xff] }
  0xde   :  { %v561_v11 = vmul.f32 %v441_v29, %v1707_v48  ;;  %v1894_v24 = vsel %vm587_vm2, %v568_v17, 0.0  ;;  %v666_v30 = vsel %vm389_vm1, %v545_v12, 0.0  ;;  %v702_v37 = vsel %vm389_vm1, %v557_v16, 0.0  ;;  %v434_v60 = vld [vmem:[%s2178_s1 + $0x148] sm:$0x1]  ;;  %v421_v21 = vld [vmem:[%s2178_s1 + $0xe0] sm:$0xff] }
  0xdf   :  { %v618_v38 = vsel %vm389_vm1, %v529_v1, 0.0  ;;  %v636_v45 = vsel %vm389_vm1, %v535_v39, 0.0  ;;  %v517_v51 = vmul.f32 %v397_v42, %v1613_v47  ;;  %v558_v26 = vmul.f32 %v438_v53, %v1707_v48  ;;  %v427_v47 = vld [vmem:[%s2178_s1 + $0x110] sm:$0x1]  ;;  %v422_v1 = vld [vmem:[%s2178_s1 + $0xe8] sm:$0xff] }
  0xe0   :  { %v1891_v22 = vsel %vm587_vm2, %v561_v11, 0.0  ;;  %v554_v16 = vmul.f32 %v434_v60, %v1643_v13  ;;  %v542_v13 = vmul.f32 %v422_v1, %v1700_v43  ;;  %v411_v42 = vld [vmem:[%s2178_s1 + $0x90] sm:$0xff]  ;;  %v832_v1 = vadd.s32 4294967264, %v1575_v23 }
  0xe1   :  { %664 = vadd.xlane.f32.xlu0 %v663_v9  ;;  %613 = vadd.xlane.f32.xlu1 %v612_v14  ;;  %v565_v14 = vmul.f32 %v445_v54, %v1780_v25  ;;  %v1869_v9 = vsel %vm389_vm1, %v564_v2, 0.0  ;;  %v404_v54 = vld [vmem:[%s2178_s1 + $0x58] sm:$0xff]  ;;  %v581_v56 = vsel %vm389_vm1, %v517_v51, 0.0  ;;  %v705_v61 = vsel %vm389_vm1, %v558_v26, 0.0 }
  0xe2   :  { %v524_v29 = vmul.f32 %v404_v54, %v1624_v52  ;;  %v439_v52 = vld [vmem:[%s2178_s1 + $0x170] sm:$0xff]  ;;  %v657_v39 = vsel %vm389_vm1, %v542_v13, 0.0 }
  0xe3   :  { %v1878_v20 = vsel %vm389_vm1, %v565_v14, 0.0  ;;  %v530_v14 = vmul.f32 %v410_v59, %v1682_v35  ;;  %v559_v17 = vmul.f32 %v439_v52, %v1707_v48 }
  0xe4   :  { %v603_v2 = vsel %vm389_vm1, %v524_v29, 0.0 }
  0xe5   :  { %697 = vadd.xlane.f32.xlu0 %v696_v18  ;;  %616 = vadd.xlane.f32.xlu1 %v615_v6  ;;  %v560_v6 = vmul.f32 %v440_v55, %v1707_v48  ;;  %v1875_v18 = vsel %vm389_vm1, %v553_v5, 0.0  ;;  %v669_v55 = vsel %vm389_vm1, %v546_v50, 0.0  ;;  %v547_v5 = vmul.f32 %v427_v47, %v1700_v43  ;;  %v423_v50 = vld [vmem:[%s2178_s1 + $0xf0] sm:$0xff] }
  0xe6   :  { %v621_v11 = vsel %vm389_vm1, %v530_v14, 0.0  ;;  %v541_v48 = vmul.f32 %v421_v21, %v1700_v43 }
  0xe7   :  { %v1881_v19 = vsel %vm389_vm1, %v560_v6, 0.0  ;;  %v416_v6 = vld [vmem:[%s2178_s1 + $0xb8] sm:$0xff] }
  0xe8   :  { %v536_v12 = vmul.f32 %v416_v6, %v1610_v46  ;;  %v446_v46 = vld [vmem:[%s2178_s1 + $0x1a8] sm:$0xff]  ;;  %v654_v33 = vsel %vm389_vm1, %v541_v48, 0.0 }
  0xe9   :  { %631 = vadd.xlane.f32.xlu0 %v1749_v7  ;;  %579 = vadd.xlane.f32.xlu1 %v578_v8  ;;  %v600_v7 = vsel %vm389_vm1, %v1752_v15, 0.0  ;;  %v563_v15 = vmul.f32 %v443_v32, %v1780_v25  ;;  %v672_v8 = vsel %vm587_vm2, %v547_v5, 0.0  ;;  %v693_v32 = vsel %vm587_vm2, %v554_v16, 0.0 }
  0xea   :  { %vm1184_vm2 = vcmask 57344  }
  0xeb   :  { %v720_v44 = vsel %vm389_vm1, %v563_v15, 0.0 }
  0xed   :  { %667 = vadd.xlane.f32.xlu0 %v666_v30  ;;  %601 = vadd.xlane.f32.xlu1 %v600_v7  ;;  %v708_v30 = vsel %vm389_vm1, %v559_v17, 0.0  ;;  %v639_v7 = vsel %vm389_vm1, %v536_v12, 0.0 }
  0xf1   :  { %703 = vadd.xlane.f32.xlu0 %v702_v37  ;;  %619 = vadd.xlane.f32.xlu1 %v618_v38  ;;  %v566_v37 = vmul.f32 %v446_v46, %v1780_v25  ;;  %v447_v38 = vld [vmem:[%s2178_s1 + $0x1b0] sm:$0xff] }
  0xf2   :  { %v567_v41 = vmul.f32 %v447_v38, %v1780_v25  ;;  %v543_v25 = vmul.f32 %v423_v50, %v1700_v43  ;;  %v2060_v38 = vsub.s32 %v832_v1, %v1299_v3 }
  0xf3   :  { %v729_v15 = vsel %vm389_vm1, %v566_v37, 0.0 }
  0xf4   :  { %v660_v53 = vsel %vm389_vm1, %v543_v25, 0.0 }
  0xf5   :  { %721 = vadd.xlane.f32.xlu0 %v720_v44  ;;  %637 = vadd.xlane.f32.xlu1 %v636_v45  ;;  %v732_v44 = vsel %vm389_vm1, %v567_v41, 0.0  ;;  %v531_v45 = vmul.f32 %v411_v42, %v1682_v35 }
  0xf7   :  { %v624_v51 = vsel %vm389_vm1, %v531_v45, 0.0  ;;  %vm851_vm1 = vcmask 458112  }
  0xf9   :  { %670 = vadd.xlane.f32.xlu0 %v669_v55  ;;  %582 = vadd.xlane.f32.xlu1 %v581_v56  ;;  %v739_v55 = vld [vmem:[%s2181_s4 + $0x8] sm:$0xff]  ;;  %v738_v56 = vld [vmem:[%s2181_s4] sm:$0xff] }
  0xfd   :  { %706 = vadd.xlane.f32.xlu0 %v705_v61  ;;  %604 = vadd.xlane.f32.xlu1 %v603_v2  ;;  %v825_v61 = vadd.s32 4294967272, %v1575_v23 }
  0xff   :  { %v2045_v6 = vsub.s32 %v825_v61, %v1299_v3 }
 0x101   :  { %673 = vadd.xlane.f32.xlu0 %v672_v8  ;;  %622 = vadd.xlane.f32.xlu1 %v621_v11 }
 0x105   :  { %709 = vadd.xlane.f32.xlu0 %v708_v30  ;;  %640 = vadd.xlane.f32.xlu1 %v639_v7 }
 0x109   :  { %694 = vadd.xlane.f32.xlu0 %v693_v32  ;;  %655 = vadd.xlane.f32.xlu1 %v654_v33 }
 0x10d   :  { %730 = vadd.xlane.f32.xlu0 %v729_v15  ;;  %658 = vadd.xlane.f32.xlu1 %v657_v39 }
 0x111   :  { %733 = vadd.xlane.f32.xlu0 %v732_v44  ;;  %585 = vadd.xlane.f32.xlu1 %v1759_v10 }
 0x115   :  { %625 = vadd.xlane.f32.xlu1 %v624_v51  ;;  %391 = vadd.xlane.f32.xlu0 %v1851_v62  ;;  %v742_v62 = vld [vmem:[%s2181_s4 + $0x20] sm:$0xff] }
 0x119   :  { %661 = vadd.xlane.f32.xlu1 %v660_v53 }
 0x11d   :  { %679 = vadd.xlane.f32.xlu1 %v1785_v31 }
 0x121   :  { %610 = vadd.xlane.f32.xlu1 %v1797_v34 }
 0x125   :  { %646 = vadd.xlane.f32.xlu1 %v1800_v36 }
 0x129   :  { %682 = vadd.xlane.f32.xlu1 %v1809_v40  ;;  %v744_v40 = vld [vmem:[%s2181_s4 + $0x30] sm:$0x1] }
 0x12d   :  { %700 = vadd.xlane.f32.xlu1 %v1819_v49  ;;  %v818_v49 = vadd.s32 4294967280, %v1575_v23 }
 0x131   :  { %649 = vadd.xlane.f32.xlu1 %v1835_v57  ;;  %v1257_v57 = vmov 0.0  }
 0x132   :  { %1212 = vmatprep.subr.mxu0 %v1257_v57  ;;  %1226 = vmatprep.mubr.msk.f32.mxu0 %vm1258_vm12, %v1257_v57 }
 0x133   :  { %1213 = vmatpush3.msk.msra.mxu0 %vm1101_vm10, %v744_v40 }
 0x134   :  { %1214 = vmatprep.subr.mxu0 %v1257_v57 }
 0x135   :  { %685 = vadd.xlane.f32.xlu1 %v1838_v58  ;;  %v743_v58 = vld [vmem:[%s2181_s4 + $0x28] sm:$0xff] }
 0x136   :  { %1215 = vmatpush3.msra.mxu0 %v743_v58 }
 0x137   :  { %1216 = vmatprep.subr.mxu0 %v1257_v57 }
 0x138   :  { %1217 = vmatpush3.msra.mxu0 %v742_v62 }
 0x139   :  { %718 = vadd.xlane.f32.xlu1 %v1854_v63  ;;  %1218 = vmatprep.subr.mxu0 %v1257_v57 }
 0x13d   :  { %652 = vadd.xlane.f32.xlu1 %v1857_v0 }
 0x141   :  { %688 = vadd.xlane.f32.xlu1 %v1861_v4 }
 0x145   :  { %724 = vadd.xlane.f32.xlu1 %v1869_v9  ;;  %v2022_v9 = vsub.s32 %v818_v49, %v1299_v3  ;;  %v839_v49 = vadd.s32 4294967256, %v1575_v23 }
 0x149   :  { %691 = vadd.xlane.f32.xlu1 %v1875_v18 }
 0x14d   :  { %727 = vadd.xlane.f32.xlu1 %v1878_v20  ;;  %v741_v20 = vld [vmem:[%s2181_s4 + $0x18] sm:$0xff] }
 0x14e   :  { %1219 = vmatpush3.msra.mxu0 %v741_v20 }
 0x14f   :  { %1220 = vmatprep.subr.mxu0 %v1257_v57 }
 0x151   :  { %712 = vadd.xlane.f32.xlu1 %v1881_v19  ;;  %v740_v19 = vld [vmem:[%s2181_s4 + $0x10] sm:$0xff] }
 0x152   :  { %v571_v35 = vpop.xlane.xlu1 %570  ;;  %1221 = vmatpush3.msra.mxu0 %v740_v19  ;;  %v635_v52 = vpop.xlane.xlu0 %634 }
 0x153   :  { %v812_v10 = vrot.slane %v571_v35, %v1582_v27  ;;  %1222 = vmatprep.subr.mxu0 %v1257_v57  ;;  %v924_v37 = vrot.slane %v635_v52, %v1582_v27 }
 0x154   :  { %1223 = vmatpush3.msra.mxu0 %v739_v55 }
 0x155   :  { %715 = vadd.xlane.f32.xlu1 %v1891_v22  ;;  %1224 = vmatprep.subr.mxu0 %v1257_v57 }
 0x156   :  { %v574_v43 = vpop.xlane.xlu1 %573  ;;  %1225 = vmatpush3.msra.mxu0 %v738_v56  ;;  %v608_v21 = vpop.xlane.xlu0 %607  ;;  %v846_v56 = vadd.s32 4294967248, %v1575_v23 }
 0x157   :  { %v816_v31 = vrot.slane %v574_v43, %v1585_v28 }
 0x159   :  { %v817_v34 = vsel %vm309_vm0, %v816_v31, %v812_v10  ;;  %736 = vadd.xlane.f32.xlu1 %v1894_v24 }
 0x15a   :  { %v593_v36 = vpop.xlane.xlu1 %592  ;;  %v2053_v46 = vpop.xlane.xlu0 %643 }
 0x15b   :  { %v856_v0 = vrot.slane %v593_v36, %v1582_v27 }
 0x15e   :  { %v596_v63 = vpop.xlane.xlu1 %595  ;;  %v2063_v41 = vpop.xlane.xlu0 %676 }
 0x15f   :  { %v860_v4 = vrot.slane %v596_v63, %v1585_v28 }
 0x161   :  { %v861_v18 = vsel %vm309_vm0, %v860_v4, %v856_v0  ;;  %v2077_v0 = vsub.s32 %v839_v49, %v1299_v3 }
 0x162   :  { %v577_v22 = vpop.xlane.xlu1 %576  ;;  %v590_v51 = vpop.xlane.xlu0 %589 }
 0x163   :  { %v822_v24 = vrot.slane %v577_v22, %v2022_v9 }
 0x165   :  { %v824_v54 = vsel %vm823_vm11, %v822_v24, %v817_v34 }
 0x166   :  { %v599_v26 = vpop.xlane.xlu1 %598  ;;  %v629_v31 = vpop.xlane.xlu0 %628 }
 0x167   :  { %v865_v29 = vrot.slane %v599_v26, %v2022_v9 }
 0x169   :  { %v866_v47 = vsel %vm823_vm11, %v865_v29, %v861_v18 }
 0x16a   :  { %v614_v59 = vpop.xlane.xlu1 %613  ;;  %v665_v57 = vpop.xlane.xlu0 %664 }
 0x16b   :  { %v890_v5 = vrot.slane %v614_v59, %v1582_v27 }
 0x16e   :  { %v617_v2 = vpop.xlane.xlu1 %616  ;;  %v2080_v20 = vpop.xlane.xlu0 %697 }
 0x16f   :  { %v894_v14 = vrot.slane %v617_v2, %v1585_v28  ;;  %v914_v2 = vrot.slane %v629_v31, %v2077_v0 }
 0x171   :  { %v895_v8 = vsel %vm309_vm0, %v894_v14, %v890_v5  ;;  %v880_v5 = vrot.slane %v608_v21, %v2077_v0 }
 0x172   :  { %v580_v11 = vpop.xlane.xlu1 %579 }
 0x173   :  { %v829_v17 = vrot.slane %v580_v11, %v2045_v6 }
 0x175   :  { %v831_v12 = vsel %vm830_vm13, %v829_v17, %v824_v54  ;;  %v632_v54 = vpop.xlane.xlu0 %631 }
 0x176   :  { %v602_v60 = vpop.xlane.xlu1 %601 }
 0x177   :  { %v870_v30 = vrot.slane %v602_v60, %v2045_v6 }
 0x179   :  { %v871_v7 = vsel %vm830_vm13, %v870_v30, %v866_v47  ;;  %v2089_v47 = vsub.s32 %v846_v56, %v1299_v3  ;;  %v668_v59 = vpop.xlane.xlu0 %667 }
 0x17a   :  { %v620_v16 = vpop.xlane.xlu1 %619 }
 0x17b   :  { %v899_v48 = vrot.slane %v620_v16, %v2022_v9  ;;  %v850_v52 = vrot.slane %v590_v51, %v2089_v47  ;;  %v919_v11 = vrot.slane %v632_v54, %v2089_v47 }
 0x17d   :  { %v900_v32 = vsel %vm823_vm11, %v899_v48, %v895_v8  ;;  %v704_v17 = vpop.xlane.xlu0 %703 }
 0x17e   :  { %v638_v33 = vpop.xlane.xlu1 %637 }
 0x17f   :  { %v928_v13 = vrot.slane %v638_v33, %v1585_v28 }
 0x181   :  { %v929_v15 = vsel %vm309_vm0, %v928_v13, %v924_v37  ;;  %v722_v1 = vpop.xlane.xlu0 %721 }
 0x182   :  { %v583_v39 = vpop.xlane.xlu1 %582 }
 0x183   :  { %v836_v42 = vrot.slane %v583_v39, %v2060_v38 }
 0x185   :  { %v838_v44 = vsel %vm837_vm14, %v836_v42, %v831_v12  ;;  %v671_v33 = vpop.xlane.xlu0 %670  ;;  %v972_v42 = vrot.slane %v665_v57, %v2045_v6 }
 0x186   :  { %v605_v45 = vpop.xlane.xlu1 %604 }
 0x187   :  { %v875_v50 = vrot.slane %v605_v45, %v2060_v38 }
 0x189   :  { %v876_v25 = vsel %vm837_vm14, %v875_v50, %v871_v7  ;;  %v977_v50 = vrot.slane %v668_v59, %v2060_v38 }
 0x18a   :  { %v623_v53 = vpop.xlane.xlu1 %622  ;;  %v881_v3 = vsel %vm844_vm15, %v880_v5, %v876_v25 }
 0x18b   :  { %v904_v35 = vrot.slane %v623_v53, %v2045_v6  ;;  %v938_v53 = vrot.slane %v2053_v46, %v2045_v6 }
 0x18d   :  { %v905_v43 = vsel %vm830_vm13, %v904_v35, %v900_v32 }
 0x18e   :  { %v641_v10 = vpop.xlane.xlu1 %640 }
 0x18f   :  { %v933_v34 = vrot.slane %v641_v10, %v2022_v9  ;;  %v982_v10 = vrot.slane %v671_v33, %v2077_v0 }
 0x191   :  { %v934_v36 = vsel %vm823_vm11, %v933_v34, %v929_v15 }
 0x192   :  { %v656_v40 = vpop.xlane.xlu1 %655  ;;  %v939_v34 = vsel %vm830_vm13, %v938_v53, %v934_v36 }
 0x193   :  { %v958_v62 = vrot.slane %v656_v40, %v1582_v27 }
 0x196   :  { %v659_v58 = vpop.xlane.xlu1 %658 }
 0x197   :  { %v962_v63 = vrot.slane %v659_v58, %v1585_v28 }
 0x199   :  { %v963_v4 = vsel %vm309_vm0, %v962_v63, %v958_v62 }
 0x19a   :  { %v586_v18 = vpop.xlane.xlu1 %585 }
 0x19b   :  { %v843_v19 = vrot.slane %v586_v18, %v2077_v0 }
 0x19d   :  { %v845_v22 = vsel %vm844_vm15, %v843_v19, %v838_v44  ;;  %v707_v44 = vpop.xlane.xlu0 %706 }
 0x19e   :  { %v626_v24 = vpop.xlane.xlu1 %625  ;;  %v852_v12 = vsel %vm851_vm1, %v850_v52, %v845_v22  ;;  %v1035_v52 = vrot.slane %v704_v17, %v2022_v9 }
 0x19f   :  { %v909_v26 = vrot.slane %v626_v24, %v2060_v38 }
 0x1a1   :  { %v910_v61 = vsel %vm837_vm14, %v909_v26, %v905_v43  ;;  %v674_v31 = vpop.xlane.xlu0 %673  ;;  %v1026_v26 = vrot.slane %v2080_v20, %v1582_v27 }
 0x1a2   :  { %v662_v55 = vpop.xlane.xlu1 %661  ;;  %v915_v23 = vsel %vm844_vm15, %v914_v2, %v910_v61  ;;  %v987_v62 = vrot.slane %v674_v31, %v2089_v47 }
 0x1a3   :  { %v920_v30 = vsel %vm851_vm1, %v919_v11, %v915_v23  ;;  %v967_v37 = vrot.slane %v662_v55, %v2022_v9  ;;  %v1064_v11 = vrot.slane %v722_v1, %v1585_v28 }
 0x1a5   :  { %v968_v15 = vsel %vm823_vm11, %v967_v37, %v963_v4  ;;  %v710_v22 = vpop.xlane.xlu0 %709 }
 0x1a6   :  { %v2086_v29 = vpop.xlane.xlu1 %679  ;;  %v973_v45 = vsel %vm830_vm13, %v972_v42, %v968_v15  ;;  %v1045_v33 = vrot.slane %v710_v22, %v2060_v38 }
 0x1a7   :  { %v978_v35 = vsel %vm837_vm14, %v977_v50, %v973_v45  ;;  %v996_v59 = vrot.slane %v2086_v29, %v1585_v28 }
 0x1a8   :  { %v983_v49 = vsel %vm844_vm15, %v982_v10, %v978_v35 }
 0x1a9   :  { %v988_v4 = vsel %vm851_vm1, %v987_v62, %v983_v49  ;;  %v695_v55 = vpop.xlane.xlu0 %694 }
 0x1aa   :  { %v611_v14 = vpop.xlane.xlu1 %610  ;;  %v1021_v15 = vrot.slane %v695_v55, %v2089_v47 }
 0x1ab   :  { %v885_v8 = vrot.slane %v611_v14, %v2089_v47  ;;  %v992_v14 = vrot.slane %v2063_v41, %v1582_v27 }
 0x1ad   :  { %v886_v60 = vsel %vm851_vm1, %v885_v8, %v881_v3  ;;  %v731_v20 = vpop.xlane.xlu0 %730 }
 0x1ae   :  { %v1091_v21 = vsel %vm374_vm3, %v886_v60, %v852_v12  ;;  %v647_v7 = vpop.xlane.xlu1 %646  ;;  %v997_v12 = vsel %vm309_vm0, %v996_v59, %v992_v14 }
 0x1af   :  { %v1092_v16 = vsel %vm376_vm4, %v920_v30, %v1091_v21  ;;  %v943_v25 = vrot.slane %v647_v7, %v2060_v38  ;;  %v1040_v21 = vrot.slane %v707_v44, %v2045_v6 }
 0x1b1   :  { %v944_v57 = vsel %vm837_vm14, %v943_v25, %v939_v34  ;;  %v734_v42 = vpop.xlane.xlu0 %733 }
 0x1b2   :  { %v683_v48 = vpop.xlane.xlu1 %682  ;;  %v1084_v53 = vrot.slane %v734_v42, %v2077_v0 }
 0x1b3   :  { %v1001_v2 = vrot.slane %v683_v48, %v2022_v9 }
 0x1b5   :  { %v1002_v7 = vsel %vm823_vm11, %v1001_v2, %v997_v12 }
 0x1b6   :  { %v701_v32 = vpop.xlane.xlu1 %700 }
 0x1b7   :  { %v1030_v56 = vrot.slane %v701_v32, %v1585_v28 }
 0x1b9   :  { %v1031_v5 = vsel %vm309_vm0, %v1030_v56, %v1026_v26 }
 0x1ba   :  { %v650_v13 = vpop.xlane.xlu1 %649  ;;  %v1036_v60 = vsel %vm823_vm11, %v1035_v52, %v1031_v5 }
 0x1bb   :  { %v948_v43 = vrot.slane %v650_v13, %v2077_v0  ;;  %v1041_v1 = vsel %vm830_vm13, %v1040_v21, %v1036_v60 }
 0x1bc   :  { %v1046_v45 = vsel %vm837_vm14, %v1045_v33, %v1041_v1 }
 0x1bd   :  { %v949_v46 = vsel %vm844_vm15, %v948_v43, %v944_v57  ;;  %v392_v57 = vpop.xlane.xlu0 %391 }
 0x1be   :  { %v686_v39 = vpop.xlane.xlu1 %685 }
 0x1bf   :  { %v1006_v23 = vrot.slane %v686_v39, %v2045_v6  ;;  %v1079_v39 = vrot.slane %v731_v20, %v2060_v38 }
 0x1c1   :  { %v1007_v28 = vsel %vm830_vm13, %v1006_v23, %v1002_v7 }
 0x1c2   :  { %v719_v51 = vpop.xlane.xlu1 %718 }
 0x1c3   :  { %v1060_v8 = vrot.slane %v719_v51, %v1582_v27 }
 0x1c6   :  { %v653_v40 = vpop.xlane.xlu1 %652 }
 0x1c7   :  { %v953_v58 = vrot.slane %v653_v40, %v2089_v47 }
 0x1c9   :  { %v954_v63 = vsel %vm851_vm1, %v953_v58, %v949_v46 }
 0x1ca   :  { %v1093_v18 = vsel %vm378_vm5, %v954_v63, %v1092_v16  ;;  %v689_v19 = vpop.xlane.xlu1 %688  ;;  %v1065_v16 = vsel %vm309_vm0, %v1064_v11, %v1060_v8  ;;  %vm1098_vm0 = vcmask 400384  }
 0x1cb   :  { %v1094_v36 = vsel %vm380_vm6, %v988_v4, %v1093_v18  ;;  %v1011_v3 = vrot.slane %v689_v19, %v2060_v38 }
 0x1cd   :  { %v1012_v48 = vsel %vm837_vm14, %v1011_v3, %v1007_v28 }
 0x1ce   :  { %v725_v24 = vpop.xlane.xlu1 %724 }
 0x1cf   :  { %v1069_v29 = vrot.slane %v725_v24, %v2022_v9 }
 0x1d1   :  { %v1070_v9 = vsel %vm823_vm11, %v1069_v29, %v1065_v16 }
 0x1d2   :  { %v692_v54 = vpop.xlane.xlu1 %691 }
 0x1d3   :  { %v1016_v30 = vrot.slane %v692_v54, %v2077_v0 }
 0x1d5   :  { %v1017_v37 = vsel %vm844_vm15, %v1016_v30, %v1012_v48 }
 0x1d6   :  { %v728_v61 = vpop.xlane.xlu1 %727  ;;  %v1022_v50 = vsel %vm851_vm1, %v1021_v15, %v1017_v37 }
 0x1d7   :  { %v1074_v41 = vrot.slane %v728_v61, %v2045_v6  ;;  %v1095_v31 = vsel %vm382_vm7, %v1022_v50, %v1094_v36 }
 0x1d9   :  { %v1075_v6 = vsel %vm830_vm13, %v1074_v41, %v1070_v9 }
 0x1da   :  { %v713_v17 = vpop.xlane.xlu1 %712  ;;  %v1080_v51 = vsel %vm837_vm14, %v1079_v39, %v1075_v6 }
 0x1db   :  { %v1050_v32 = vrot.slane %v713_v17, %v2077_v0  ;;  %v1085_v38 = vsel %vm844_vm15, %v1084_v53, %v1080_v51  ;;  %v1201_v0 = vld [vmem:[%s2182_s5] ss:$0 sm:$0xff] }
 0x1dc   :  { %v752_v58 = vmul.f32 %v1201_v0, %v392_v57 }
 0x1dd   :  { %v1051_v25 = vsel %vm844_vm15, %v1050_v32, %v1046_v45 }
 0x1de   :  { %v716_v13 = vpop.xlane.xlu1 %715 }
 0x1df   :  { %v1055_v44 = vrot.slane %v716_v13, %v2089_v47 }
 0x1e1   :  { %v1056_v35 = vsel %vm851_vm1, %v1055_v44, %v1051_v25 }
 0x1e2   :  { %v737_v43 = vpop.xlane.xlu1 %736  ;;  %v1096_v40 = vsel %vm384_vm8, %v1056_v35, %v1095_v31 }
 0x1e3   :  { %v1089_v10 = vrot.slane %v737_v43, %v2089_v47 }
 0x1e5   :  { %v1090_v34 = vsel %vm851_vm1, %v1089_v10, %v1085_v38 }
 0x1e6   :  { %v1097_v49 = vsel %vm386_vm9, %v1090_v34, %v1096_v40 }
 0x1e7   :  { %1227 = vmatmul.mubr.msk.f32.vlgmr.msra.gmra.mxu0 %vm1098_vm0, %v1097_v49 }
 0x2a7   :  { %v1171_v62 = vpop.f32.mrf.mxu0 }
 0x2a8   :  { %v1172_v47 = vadd.f32 %v1171_v62, %v752_v58 }
 0x2a9   :  { %v1228_v46 = vpop.f32.mrf.mxu0 }
 0x2aa   :  { %v1175_v63 = vsel %vm1098_vm0, %v1172_v47, -inf }
 0x2ab   :  { %1176 = vmax.xlane.f32.xlu1 %v1175_v63 }
 0x334   :  { %v1177_v4 = vpop.xlane.xlu1 %1176 }
 0x335   :  { %v1182_v18 = vrot.slane %v1177_v4, %v1582_v27 }
 0x337   :  { %1185 = vst.msk [vmem:[#allocation3] sm:$0x1] %vm1184_vm2, %v1182_v18 }
 0x338   :  { %1245 = shalt.err (!%p1242_p4)
}
 0x339   :  { %1195 = dma.vmem_to_hbm [thread:$0]  %s1193_s15, 16, %s2183_s6, [#allocation4]  }
 0x33a   :  { %1254 = dma.done.wait [#allocation4], 16  }
 0x33b   :  { %1255 = vsyncadd [#allocation4], 4294967280 }
 0x33c   :  { %1199 = vsyncpa [#allocation4], 1 }

</bundles_post_ra>
